<compile_context>
chip_gen: v6e
topology: v6e:2x2x1
jax: 0.10.0
libtpu: 0.0.40
codegen_flags: <defaults>
</compile_context>

<pallas_src>
import math
import functools

import numpy as np
import jax
import jax.numpy as jnp
from jax import lax
from jax.experimental import pallas as pl
from jax.experimental.pallas import tpu as pltpu


_LANES = 128            # TPU vreg lane width -> lane-dense, unmasked stores
_MAX_TILE_ROWS = 1024   # 1024 x 128 f32 = 512 KiB per buffer


def _init_pos_encoding(dim: int, max_len: int) -> jnp.ndarray:
    """Sinusoidal PE identical to the PyTorch module; shape (max_len, 1, dim).
    (It is a module parameter, but the reference forward discards its use.)"""
    position = jnp.arange(0, max_len, dtype=jnp.float32)[:, None]
    div_term = jnp.exp(
        jnp.arange(0, dim, 2, dtype=jnp.float32) * (-math.log(10000.0) / dim)
    )
    pe = jnp.zeros((max_len, dim), dtype=jnp.float32)
    pe = pe.at[:, 0::2].set(jnp.sin(position * div_term))
    pe = pe.at[:, 1::2].set(jnp.cos(position * div_term))
    return pe[:, None, :]


def _i32(pattern: int) -> jnp.int32:
    """Wrap a 32-bit unsigned bit pattern into a signed int32 constant."""
    pattern &= 0xFFFFFFFF
    if pattern >= 0x80000000:
        pattern -= 0x100000000
    return jnp.int32(pattern)


def _mix32(h):
    """splitmix32-style integer finalizer (int32 arithmetic wraps mod 2**32)."""
    s16 = jnp.int32(16)
    s15 = jnp.int32(15)
    h = h ^ lax.shift_right_logical(h, s16)
    h = h * _i32(0x7FEB352D)
    h = h ^ lax.shift_right_logical(h, s15)
    h = h * _i32(0x846CA68B)
    h = h ^ lax.shift_right_logical(h, s16)
    return h


def _dropout_kernel(seed_ref, x_ref, o_ref, *, p: float, tile_rows: int):
    """Training-mode inverted-scaling dropout on one (tile_rows, 128) block."""
    rows, lanes = x_ref.shape

    # Global flat element index of every element in this tile (the counter).
    row_ids = lax.broadcasted_iota(jnp.int32, (rows, lanes), 0)
    lane_ids = lax.broadcasted_iota(jnp.int32, (rows, lanes), 1)
    base_row = pl.program_id(0) * tile_rows
    idx = (row_ids + base_row) * lanes + lane_ids

    # Counter-based PRNG: hash(global index, seed) -> 31 uniform bits.
    # Per-tile masks are automatically distinct (and tiling-invariant)
    # because the counter is the global element index.
    h = _mix32(idx ^ (seed_ref[0] * _i32(0x9E3779B9)))
    u = h & _i32(0x7FFFFFFF)                               # uniform in [0, 2^31)
    threshold = jnp.int32(int(round(p * 2147483648.0)))    # keep iff u >= p*2^31
    keep = u >= threshold

    scale = jnp.float32(1.0 / (1.0 - p))
    x = x_ref[...]
    o_ref[...] = jnp.where(keep, x * scale, jnp.zeros_like(x)).astype(o_ref.dtype)


def positional_encoding_forward(x: jnp.ndarray,
                                seed: jnp.ndarray,
                                *,
                                p: float = 0.1,
                                training: bool = True) -> jnp.ndarray:
    """PositionalEncoding.forward: the `x + pe` in the reference is dead code,
    so the output is exactly nn.Dropout(p)(x) (training mode)."""
    if not training or p == 0.0:
        return x
    if not (0.0 < p < 1.0):
        raise ValueError("dropout p must lie in (0, 1) for the kernel path")

    orig_shape, orig_dtype = x.shape, x.dtype
    n = x.size

    # Flatten to a lane-dense (rows, 128) slab; pad rows to a whole number of
    # tiles (tile rows are a multiple of 8 to satisfy the (8, 128) constraint).
    rows = pl.cdiv(n, _LANES)
    tile_rows = min(_MAX_TILE_ROWS, pl.cdiv(rows, 8) * 8)
    rows_padded = pl.cdiv(rows, tile_rows) * tile_rows
    n_padded = rows_padded * _LANES
    num_tiles = rows_padded // tile_rows

    x_flat = jnp.ravel(x).astype(jnp.float32)
    if n_padded != n:
        x_flat = jnp.pad(x_flat, (0, n_padded - n))
    x2d = x_flat.reshape(rows_padded, _LANES)

    kernel = functools.partial(_dropout_kernel, p=p, tile_rows=tile_rows)

    out2d = pl.pallas_call(
        kernel,
        out_shape=jax.ShapeDtypeStruct((rows_padded, _LANES), jnp.float32),
        grid_spec=pltpu.PrefetchScalarGridSpec(
            num_scalar_prefetch=1,          # seed lands in SMEM
            grid=(num_tiles,),
            in_specs=[
                pl.BlockSpec((tile_rows, _LANES), lambda i, seed_ref: (i, 0)),
            ],
            out_specs=pl.BlockSpec((tile_rows, _LANES), lambda i, seed_ref: (i, 0)),
        ),
        compiler_params=pltpu.CompilerParams(
            # tiles are independent -> shard across both TensorCores on v7x
            dimension_semantics=("parallel",),
        ),
    )(seed, x2d)

    out = out2d.reshape(-1)
    if n_padded != n:
        out = out[:n]
    return out.reshape(orig_shape).astype(orig_dtype)


if __name__ == "__main__":
    # Small shapes consistent with the module: seq=8, batch=2, dim=32.
    S, B, D = 8, 2, 32
    MAX_LEN = 64
    P_DROP = 0.1

    key = jax.random.PRNGKey(0)
    x = jax.random.normal(key, (S, B, D), dtype=jnp.float32)
    pe = _init_pos_encoding(D, MAX_LEN)          # module param; unused by the output (dead code in ref)
    seed = jnp.array([1234], dtype=jnp.int32)

    out = positional_encoding_forward(x, seed, p=P_DROP)
    out = jax.block_until_ready(out)

    # Sanity checks: shape/dtype match, surviving elements equal x / (1 - p)
    # (i.e. the discarded PE add did NOT leak into the output), and the drop
    # rate is in a sane range.
    assert out.shape == x.shape and out.dtype == x.dtype
    out_np = np.asarray(out)
    exp_np = np.asarray(x) * np.float32(1.0 / (1.0 - P_DROP))
    kept = out_np != 0.0
    np.testing.assert_allclose(out_np[kept], exp_np[kept], rtol=1e-6, atol=1e-6)
    drop_frac = 1.0 - kept.mean()
    assert 0.0 <= drop_frac <= 0.5, f"implausible drop fraction {drop_frac}"

    print("KERNEL_OK")
</pallas_src>

<mosaic_0001>
module attributes {stable_mosaic.version = 11 : i64} {
  func.func @_dropout_kernel(%arg0: i32, %arg1: memref<1xi32, #tpu.memory_space<smem>>, %arg2: memref<8x128xf32, #tpu.memory_space<vmem>>, %arg3: memref<8x128xf32, #tpu.memory_space<vmem>>) attributes {dimension_semantics = [#tpu.dimension_semantics<parallel>], iteration_bounds = array<i64: 1>, scalar_prefetch = 1 : i64, scratch_operands = 0 : i64, tpu.core_type = #tpu.core_type<tc>, window_params = [{transform_indices = @transform_0, window_bounds = array<i64: 8, 128>}, {transform_indices = @transform_1, window_bounds = array<i64: 8, 128>}]} {
    %0 = tpu.iota {dimensions = array<i32: 0>} : vector<8x128xi32>
    %1 = tpu.iota {dimensions = array<i32: 1>} : vector<8x128xi32>
    %c8_i32 = arith.constant 8 : i32
    %2 = arith.muli %arg0, %c8_i32 : i32
    %3 = vector.broadcast %2 : i32 to vector<8x128xi32>
    %4 = arith.addi %0, %3 : vector<8x128xi32>
    %c128_i32 = arith.constant 128 : i32
    %5 = vector.broadcast %c128_i32 : i32 to vector<8x128xi32>
    %6 = arith.muli %4, %5 : vector<8x128xi32>
    %7 = arith.addi %6, %1 : vector<8x128xi32>
    %c0 = arith.constant 0 : index
    %8 = memref.load %arg1[%c0] : memref<1xi32, #tpu.memory_space<smem>>
    %c-1640531527_i32 = arith.constant -1640531527 : i32
    %9 = arith.muli %8, %c-1640531527_i32 : i32
    %10 = vector.broadcast %9 : i32 to vector<8x128xi32>
    %11 = arith.xori %7, %10 : vector<8x128xi32>
    %c16_i32 = arith.constant 16 : i32
    %12 = vector.broadcast %c16_i32 : i32 to vector<8x128xi32>
    %13 = arith.shrui %11, %12 : vector<8x128xi32>
    %14 = arith.xori %11, %13 : vector<8x128xi32>
    %c2146121005_i32 = arith.constant 2146121005 : i32
    %15 = vector.broadcast %c2146121005_i32 : i32 to vector<8x128xi32>
    %16 = arith.muli %14, %15 : vector<8x128xi32>
    %c15_i32 = arith.constant 15 : i32
    %17 = vector.broadcast %c15_i32 : i32 to vector<8x128xi32>
    %18 = arith.shrui %16, %17 : vector<8x128xi32>
    %19 = arith.xori %16, %18 : vector<8x128xi32>
    %c-2073254261_i32 = arith.constant -2073254261 : i32
    %20 = vector.broadcast %c-2073254261_i32 : i32 to vector<8x128xi32>
    %21 = arith.muli %19, %20 : vector<8x128xi32>
    %c16_i32_0 = arith.constant 16 : i32
    %22 = vector.broadcast %c16_i32_0 : i32 to vector<8x128xi32>
    %23 = arith.shrui %21, %22 : vector<8x128xi32>
    %24 = arith.xori %21, %23 : vector<8x128xi32>
    %c2147483647_i32 = arith.constant 2147483647 : i32
    %25 = vector.broadcast %c2147483647_i32 : i32 to vector<8x128xi32>
    %26 = arith.andi %24, %25 : vector<8x128xi32>
    %c214748365_i32 = arith.constant 214748365 : i32
    %27 = vector.broadcast %c214748365_i32 : i32 to vector<8x128xi32>
    %28 = arith.cmpi sge, %26, %27 : vector<8x128xi32>
    %c0_1 = arith.constant 0 : index
    %c0_2 = arith.constant 0 : index
    %29 = vector.load %arg2[%c0_1, %c0_2] : memref<8x128xf32, #tpu.memory_space<vmem>>, vector<8x128xf32>
    %cst = arith.constant 1.11111116 : f32
    %30 = vector.broadcast %cst : f32 to vector<8x128xf32>
    %31 = arith.mulf %29, %30 : vector<8x128xf32>
    %cst_3 = arith.constant 0.000000e+00 : f32
    %32 = vector.broadcast %cst_3 : f32 to vector<8x128xf32>
    %33 = arith.select %28, %31, %32 : vector<8x128xi1>, vector<8x128xf32>
    %c0_4 = arith.constant 0 : index
    %c0_5 = arith.constant 0 : index
    %34 = vector.load %arg3[%c0_4, %c0_5] : memref<8x128xf32, #tpu.memory_space<vmem>>, vector<8x128xf32>
    tpu.vector_store %arg3[%c0_4, %c0_5], %33 {strides = array<i32>} : memref<8x128xf32, #tpu.memory_space<vmem>>, vector<8x128xf32>,
    return
  }
  func.func @transform_0(%arg0: i32, %arg1: memref<1xi32, #tpu.memory_space<smem>>) -> (i32, i32) {
    %c0_i32 = arith.constant 0 : i32
    %c0_i32_0 = arith.constant 0 : i32
    return %arg0, %c0_i32 : i32, i32
  }
  func.func @transform_1(%arg0: i32, %arg1: memref<1xi32, #tpu.memory_space<smem>>) -> (i32, i32) {
    %c0_i32 = arith.constant 0 : i32
    %c0_i32_0 = arith.constant 0 : i32
    return %arg0, %c0_i32 : i32, i32
  }
}

</mosaic_0001>

<bundles_post_ra>
// kernel: tpu_custom_call.1
= control target key start
LH: loop header
LB: loop body
LE: loop exit
PB: predicated region body
PF: predicated region fallthrough
CT: control target
= control target key end

     0   :  { %8 = vsyncpa [#allocation5], 0  ;;  %s137_s0 = inlined_call_operand.<no memory space> [shape: s32[1], index: 0, kind: input, shape index: {}]   ;;  %s138_s1 = inlined_call_operand.hbm [shape: f32[8,128], index: 1, kind: input, shape index: {}]   ;;  %s139_s2 = inlined_call_operand.hbm [shape: f32[8,128], index: 2, kind: output, shape index: {}]  }
   0x1   :  { %9 = vsyncpa [#allocation6], 0  ;;  %s111_s9 = smov [#allocation4]  }
   0x2   :  { %s16_s10 = sshll.u32 %s111_s9, 4  ;;  %s17_s10 = int_to_ptr.vmem [resolvable:$true] %s16_s10 }
   0x3   :  { %s75_s11 = scalar_lea.vmem %s17_s10, 128  ;;  %p80_p1 = scmp.lt.s32.totalorder %s17_s10, %s17_s10 }
   0x4   :  { %p76_p0 = scmp.ne.s32.totalorder %s17_s10, %s75_s11  ;;  %p81_p2 = scmp.lt.s32.totalorder %s75_s11, %s75_s11 }
   0x6   :  { %p82_p3 = por %p81_p2, %p80_p1 }
   0x8   :  { %p83_p4 = pnand %p82_p3, %p76_p0 }
   0xa   :  { %86 = shalt.err (!%p83_p4)
}
   0xb   :  { %19 = dma.hbm_to_vmem [thread:$0]  %s138_s1, 128, %s17_s10, [#allocation5]  }
   0xc   :  { %107 = dma.done.wait [#allocation5], 128  }
   0xd   :  { %108 = vsyncadd [#allocation5], 4294967168  ;;  %v23_v0 = vlaneseq  ;;  %s33_s16 = smul.u32 2654435769, %s137_s0  ;;  %v46_v14 = vld [vmem:[#allocation4] sm:$0xff]  ;;  %s112_s1 = smov [#allocation7]  }
   0xe   :  { %v47_v16 = vmul.f32 1.1111112, %v46_v14  ;;  %s56_s17 = sshll.u32 %s112_s1, 4  ;;  %s57_s17 = int_to_ptr.vmem [resolvable:$true] %s56_s17 }
   0xf   :  { %v24_v1 = vshrl.u32 %v23_v0, 7  ;;  %v26_v2 = vand.u32 127, %v23_v0  ;;  %v34_v4 = vstv %s33_s16  ;;  %s87_s0 = scalar_lea.vmem %s57_s17, 128  ;;  %p92_p6 = scmp.lt.s32.totalorder %s57_s17, %s57_s17 }
  0x10   :  { %p88_p5 = scmp.ne.s32.totalorder %s57_s17, %s87_s0  ;;  %p93_p7 = scmp.lt.s32.totalorder %s87_s0, %s87_s0 }
  0x11   :  { %v30_v3 = vmul.u32 128, %v24_v1 }
  0x12   :  { %p94_p8 = por %p93_p7, %p92_p6 }
  0x13   :  { %v31_v5 = vadd.s32 %v30_v3, %v26_v2 }
  0x14   :  { %p95_p9 = pnand %p94_p8, %p88_p5 }
  0x15   :  { %v35_v6 = vxor.u32 %v34_v4, %v31_v5 }
  0x17   :  { %v36_v7 = vshrl.u32 %v35_v6, 16 }
  0x19   :  { %v37_v8 = vxor.u32 %v36_v7, %v35_v6 }
  0x1b   :  { %v38_v9 = vmul.u32 2146121005, %v37_v8 }
  0x1d   :  { %v39_v10 = vshrl.u32 %v38_v9, 15 }
  0x1f   :  { %v40_v11 = vxor.u32 %v39_v10, %v38_v9 }
  0x21   :  { %v41_v12 = vmul.u32 2221713035, %v40_v11 }
  0x23   :  { %v42_v13 = vshrl.u32 %v41_v12, 16 }
  0x25   :  { %v43_v15 = vxor.u32 %v42_v13, %v41_v12 }
  0x27   :  { %v44_v17 = vand.u32 2147483647, %v43_v15 }
  0x29   :  { %vm45_vm0 = vcmp.ge.s32.totalorder %v44_v17, 214748365 }
  0x2a   :  { %v48_v18 = vsel %vm45_vm0, %v47_v16, 0.0 }
  0x2b   :  { %49 = vst [vmem:[#allocation7] sm:$0xff] %v48_v18 }
  0x2c   :  { %98 = shalt.err (!%p95_p9)
}
  0x2d   :  { %59 = dma.vmem_to_hbm [thread:$0]  %s57_s17, 128, %s139_s2, [#allocation6]  }
  0x2e   :  { %109 = dma.done.wait [#allocation6], 128  }
  0x2f   :  { %110 = vsyncadd [#allocation6], 4294967168 }
  0x30   :  { %63 = vsyncpa [#allocation5], 1 }
  0x31   :  { %64 = vsyncpa [#allocation6], 1 }

</bundles_post_ra>
